<compile_context>
chip_gen: v7x
topology: tpu7x:2x2x1
jax: 0.10.0
libtpu: 0.0.40
codegen_flags: <defaults>
</compile_context>

<pallas_src>
import math

import jax
import jax.numpy as jnp
from jax.experimental import pallas as pl
from jax.experimental.pallas import tpu as pltpu


def _offset_scale_kernel(x_ref, g_ref, b_ref, *out_refs):
    # x_ref:    VMEM (tm, Dp)   -- tile of (lane-packed) input rows, x.dtype
    # g_ref:    VMEM (H, Dp)    -- gamma, lane-tiled to packed width, f32
    # b_ref:    VMEM (H, Dp)    -- beta,  lane-tiled to packed width, f32
    # out_refs: H x VMEM (tm, Dp) -- per-head affine outputs, x.dtype
    for h, o_ref in enumerate(out_refs):          # static unroll; H is small
        x = x_ref[...].astype(jnp.float32)        # re-read per head: flat vreg pressure
        g = g_ref[h:h + 1, :]                     # (1, Dp) -> broadcast over rows
        b = b_ref[h:h + 1, :]
        o_ref[...] = (x * g + b).astype(o_ref.dtype)


def _choose_tile_rows(Mp, Dp, H, itemsize, *, vmem_budget=12 << 20,
                      min_steps=8, tm_cap=2048):
    """Pick the row-tile size: fits double-buffered VMEM, keeps >= min_steps grid
    steps for medium/large inputs, and is a multiple of 8 (or the full extent)."""
    # double-buffered footprint: x tile + H output tiles, 2 buffers each
    bytes_per_row = 2 * (1 + H) * Dp * itemsize
    tm_vmem = max(8, (vmem_budget // bytes_per_row) // 8 * 8)
    # aim for >= min_steps steps so megacore + DMA pipelining actually engage
    tm_steps = -(-Mp // min_steps)
    tm_steps = max(8, -(-tm_steps // 8) * 8)       # round up to multiple of 8
    tm = min(tm_vmem, tm_steps, tm_cap)
    if tm >= Mp:
        return Mp                                  # single block == full extent (layout-legal)
    return tm


def offset_scale(x, gamma, beta):
    """x: (..., d);  gamma, beta: (heads, d).
    Returns a tuple of `heads` arrays, each shaped like x (PyTorch out.unbind(-2)).
    Output dtype matches x.dtype; the affine is computed in f32."""
    H, D = gamma.shape
    lead_shape = x.shape[:-1]
    M = 1
    for s in lead_shape:
        M *= s

    x_flat = x.reshape(M, D)
    gamma_f = gamma.astype(jnp.float32)
    beta_f = beta.astype(jnp.float32)

    # Lane-dense packing: fold `pack` consecutive positions into one lane-aligned
    # row so stores are full-width vst.  pack = 128 // gcd(D, 128).
    pack = 128 // math.gcd(D, 128)
    if pack > 1 and M % pack == 0 and D * pack <= 512:
        pass
    else:
        pack = 1
    Mp = M // pack
    Dp = D * pack

    x_p = x_flat.reshape(Mp, Dp)
    g_p = jnp.tile(gamma_f, (1, pack))             # (H, Dp): [g, g, ..., g]
    b_p = jnp.tile(beta_f, (1, pack))

    itemsize = jnp.dtype(x.dtype).itemsize
    tm = _choose_tile_rows(Mp, Dp, H, itemsize)
    grid = (pl.cdiv(Mp, tm),)

    cost = pl.CostEstimate(
        flops=2 * H * M * D,
        transcendentals=0,
        bytes_accessed=(1 + H) * M * D * itemsize + 2 * H * D * 4,
    )

    outs = pl.pallas_call(
        _offset_scale_kernel,
        out_shape=tuple(
            jax.ShapeDtypeStruct((Mp, Dp), x.dtype) for _ in range(H)
        ),
        grid=grid,
        in_specs=[
            pl.BlockSpec((tm, Dp), lambda i: (i, 0)),     # x tile
            pl.BlockSpec((H, Dp), lambda i: (0, 0)),      # gamma (constant across steps)
            pl.BlockSpec((H, Dp), lambda i: (0, 0)),      # beta  (constant across steps)
        ],
        out_specs=tuple(
            pl.BlockSpec((tm, Dp), lambda i: (i, 0)) for _ in range(H)
        ),
        compiler_params=pltpu.CompilerParams(
            dimension_semantics=("parallel",)),           # shard rows across TCs (v7x)
        cost_estimate=cost,
    )(x_p, g_p, b_p)

    return tuple(o.reshape(lead_shape + (D,)) for o in outs)


def _reference(x, gamma, beta):
    out = jnp.einsum('...d,hd->...hd',
                     x.astype(jnp.float32), gamma.astype(jnp.float32))
    out = out + beta.astype(jnp.float32)
    out = jnp.moveaxis(out, -2, 0)                  # (H, ..., D)
    return tuple(out[h].astype(x.dtype) for h in range(out.shape[0]))


def _check(x, gamma, beta):
    outs = jax.block_until_ready(offset_scale(x, gamma, beta))
    refs = _reference(x, gamma, beta)
    assert len(outs) == gamma.shape[0]
    for o, r in zip(outs, refs):
        assert o.shape == x.shape
        assert o.dtype == x.dtype
        assert jnp.allclose(o.astype(jnp.float32), r.astype(jnp.float32),
                            atol=1e-5, rtol=1e-5)


if __name__ == "__main__":
    key = jax.random.PRNGKey(0)
    kx, kg = jax.random.split(key)

    # module config matching MossFormer usage: dim=32, heads=4; x: (batch=2, seq=8, dim=32)
    batch, seq, dim, heads = 2, 8, 32, 4
    x = jax.random.normal(kx, (batch, seq, dim), dtype=jnp.float32)
    gamma = 0.02 * jax.random.normal(kg, (heads, dim), dtype=jnp.float32)  # nn.init.normal_(std=0.02)
    beta = jnp.zeros((heads, dim), dtype=jnp.float32)                      # zeros init
    _check(x, gamma, beta)

    # exercise the generalized packing path (dim=48 -> pack=8, Dp=384)
    dim2, heads2 = 48, 1
    x2 = jax.random.normal(kx, (batch, seq, dim2), dtype=jnp.float32)
    gamma2 = 0.02 * jax.random.normal(kg, (heads2, dim2), dtype=jnp.float32)
    beta2 = jnp.zeros((heads2, dim2), dtype=jnp.float32)
    _check(x2, gamma2, beta2)

    # exercise a multi-step grid with a partial last tile (M=72 -> Mp=18, tm=8)
    x3 = jax.random.normal(kx, (2, 36, dim), dtype=jnp.float32)
    _check(x3, gamma, beta)

    # exercise native bf16 I/O (output dtype follows x.dtype)
    x4 = jax.random.normal(kx, (batch, seq, dim), dtype=jnp.bfloat16)
    outs4 = jax.block_until_ready(offset_scale(x4, gamma, beta))
    refs4 = _reference(x4, gamma, beta)
    for o, r in zip(outs4, refs4):
        assert o.dtype == jnp.bfloat16 and o.shape == x4.shape
        assert jnp.allclose(o.astype(jnp.float32), r.astype(jnp.float32),
                            atol=2e-2, rtol=2e-2)

    print("KERNEL_OK")
</pallas_src>

<mosaic_0001>
module attributes {stable_mosaic.version = 11 : i64} {
  func.func @_offset_scale_kernel(%arg0: i32, %arg1: memref<4x128xf32, #tpu.memory_space<vmem>>, %arg2: memref<4x128xf32, #tpu.memory_space<vmem>>, %arg3: memref<4x128xf32, #tpu.memory_space<vmem>>, %arg4: memref<4x128xf32, #tpu.memory_space<vmem>>, %arg5: memref<4x128xf32, #tpu.memory_space<vmem>>, %arg6: memref<4x128xf32, #tpu.memory_space<vmem>>, %arg7: memref<4x128xf32, #tpu.memory_space<vmem>>) attributes {dimension_semantics = [#tpu.dimension_semantics<parallel>], iteration_bounds = array<i64: 1>, scalar_prefetch = 0 : i64, scratch_operands = 0 : i64, tpu.core_type = #tpu.core_type<tc>, window_params = [{transform_indices = @transform_0, window_bounds = array<i64: 4, 128>}, {pipeline_mode = #tpu.pipeline_mode<synchronous>, transform_indices = @transform_1, window_bounds = array<i64: 4, 128>}, {pipeline_mode = #tpu.pipeline_mode<synchronous>, transform_indices = @transform_2, window_bounds = array<i64: 4, 128>}, {transform_indices = @transform_3, window_bounds = array<i64: 4, 128>}, {transform_indices = @transform_4, window_bounds = array<i64: 4, 128>}, {transform_indices = @transform_5, window_bounds = array<i64: 4, 128>}, {transform_indices = @transform_6, window_bounds = array<i64: 4, 128>}]} {
    %c0 = arith.constant 0 : index
    %c0_0 = arith.constant 0 : index
    %0 = vector.load %arg1[%c0, %c0_0] : memref<4x128xf32, #tpu.memory_space<vmem>>, vector<4x128xf32>
    %c0_1 = arith.constant 0 : index
    %c0_2 = arith.constant 0 : index
    %1 = vector.load %arg2[%c0_1, %c0_2] : memref<4x128xf32, #tpu.memory_space<vmem>>, vector<1x128xf32>
    %c0_3 = arith.constant 0 : index
    %c0_4 = arith.constant 0 : index
    %2 = vector.load %arg3[%c0_3, %c0_4] : memref<4x128xf32, #tpu.memory_space<vmem>>, vector<1x128xf32>
    %3 = vector.broadcast %1 : vector<1x128xf32> to vector<4x128xf32>
    %4 = arith.mulf %0, %3 : vector<4x128xf32>
    %5 = vector.broadcast %2 : vector<1x128xf32> to vector<4x128xf32>
    %6 = arith.addf %4, %5 : vector<4x128xf32>
    %c0_5 = arith.constant 0 : index
    %c0_6 = arith.constant 0 : index
    %7 = vector.load %arg4[%c0_5, %c0_6] : memref<4x128xf32, #tpu.memory_space<vmem>>, vector<4x128xf32>
    tpu.vector_store %arg4[%c0_5, %c0_6], %6 {strides = array<i32>} : memref<4x128xf32, #tpu.memory_space<vmem>>, vector<4x128xf32>,
    %c0_7 = arith.constant 0 : index
    %c0_8 = arith.constant 0 : index
    %8 = vector.load %arg1[%c0_7, %c0_8] : memref<4x128xf32, #tpu.memory_space<vmem>>, vector<4x128xf32>
    %c1 = arith.constant 1 : index
    %c0_9 = arith.constant 0 : index
    %9 = vector.load %arg2[%c1, %c0_9] : memref<4x128xf32, #tpu.memory_space<vmem>>, vector<1x128xf32>
    %c1_10 = arith.constant 1 : index
    %c0_11 = arith.constant 0 : index
    %10 = vector.load %arg3[%c1_10, %c0_11] : memref<4x128xf32, #tpu.memory_space<vmem>>, vector<1x128xf32>
    %11 = vector.broadcast %9 : vector<1x128xf32> to vector<4x128xf32>
    %12 = arith.mulf %8, %11 : vector<4x128xf32>
    %13 = vector.broadcast %10 : vector<1x128xf32> to vector<4x128xf32>
    %14 = arith.addf %12, %13 : vector<4x128xf32>
    %c0_12 = arith.constant 0 : index
    %c0_13 = arith.constant 0 : index
    %15 = vector.load %arg5[%c0_12, %c0_13] : memref<4x128xf32, #tpu.memory_space<vmem>>, vector<4x128xf32>
    tpu.vector_store %arg5[%c0_12, %c0_13], %14 {strides = array<i32>} : memref<4x128xf32, #tpu.memory_space<vmem>>, vector<4x128xf32>,
    %c0_14 = arith.constant 0 : index
    %c0_15 = arith.constant 0 : index
    %16 = vector.load %arg1[%c0_14, %c0_15] : memref<4x128xf32, #tpu.memory_space<vmem>>, vector<4x128xf32>
    %c2 = arith.constant 2 : index
    %c0_16 = arith.constant 0 : index
    %17 = vector.load %arg2[%c2, %c0_16] : memref<4x128xf32, #tpu.memory_space<vmem>>, vector<1x128xf32>
    %c2_17 = arith.constant 2 : index
    %c0_18 = arith.constant 0 : index
    %18 = vector.load %arg3[%c2_17, %c0_18] : memref<4x128xf32, #tpu.memory_space<vmem>>, vector<1x128xf32>
    %19 = vector.broadcast %17 : vector<1x128xf32> to vector<4x128xf32>
    %20 = arith.mulf %16, %19 : vector<4x128xf32>
    %21 = vector.broadcast %18 : vector<1x128xf32> to vector<4x128xf32>
    %22 = arith.addf %20, %21 : vector<4x128xf32>
    %c0_19 = arith.constant 0 : index
    %c0_20 = arith.constant 0 : index
    %23 = vector.load %arg6[%c0_19, %c0_20] : memref<4x128xf32, #tpu.memory_space<vmem>>, vector<4x128xf32>
    tpu.vector_store %arg6[%c0_19, %c0_20], %22 {strides = array<i32>} : memref<4x128xf32, #tpu.memory_space<vmem>>, vector<4x128xf32>,
    %c0_21 = arith.constant 0 : index
    %c0_22 = arith.constant 0 : index
    %24 = vector.load %arg1[%c0_21, %c0_22] : memref<4x128xf32, #tpu.memory_space<vmem>>, vector<4x128xf32>
    %c3 = arith.constant 3 : index
    %c0_23 = arith.constant 0 : index
    %25 = vector.load %arg2[%c3, %c0_23] : memref<4x128xf32, #tpu.memory_space<vmem>>, vector<1x128xf32>
    %c3_24 = arith.constant 3 : index
    %c0_25 = arith.constant 0 : index
    %26 = vector.load %arg3[%c3_24, %c0_25] : memref<4x128xf32, #tpu.memory_space<vmem>>, vector<1x128xf32>
    %27 = vector.broadcast %25 : vector<1x128xf32> to vector<4x128xf32>
    %28 = arith.mulf %24, %27 : vector<4x128xf32>
    %29 = vector.broadcast %26 : vector<1x128xf32> to vector<4x128xf32>
    %30 = arith.addf %28, %29 : vector<4x128xf32>
    %c0_26 = arith.constant 0 : index
    %c0_27 = arith.constant 0 : index
    %31 = vector.load %arg7[%c0_26, %c0_27] : memref<4x128xf32, #tpu.memory_space<vmem>>, vector<4x128xf32>
    tpu.vector_store %arg7[%c0_26, %c0_27], %30 {strides = array<i32>} : memref<4x128xf32, #tpu.memory_space<vmem>>, vector<4x128xf32>,
    return
  }
  func.func @transform_0(%arg0: i32) -> (i32, i32) {
    %c0_i32 = arith.constant 0 : i32
    %c0_i32_0 = arith.constant 0 : i32
    return %arg0, %c0_i32 : i32, i32
  }
  func.func @transform_1(%arg0: i32) -> (i32, i32) {
    %c0_i32 = arith.constant 0 : i32
    %c0_i32_0 = arith.constant 0 : i32
    %c0_i32_1 = arith.constant 0 : i32
    return %c0_i32, %c0_i32_0 : i32, i32
  }
  func.func @transform_2(%arg0: i32) -> (i32, i32) {
    %c0_i32 = arith.constant 0 : i32
    %c0_i32_0 = arith.constant 0 : i32
    %c0_i32_1 = arith.constant 0 : i32
    return %c0_i32, %c0_i32_0 : i32, i32
  }
  func.func @transform_3(%arg0: i32) -> (i32, i32) {
    %c0_i32 = arith.constant 0 : i32
    %c0_i32_0 = arith.constant 0 : i32
    return %arg0, %c0_i32 : i32, i32
  }
  func.func @transform_4(%arg0: i32) -> (i32, i32) {
    %c0_i32 = arith.constant 0 : i32
    %c0_i32_0 = arith.constant 0 : i32
    return %arg0, %c0_i32 : i32, i32
  }
  func.func @transform_5(%arg0: i32) -> (i32, i32) {
    %c0_i32 = arith.constant 0 : i32
    %c0_i32_0 = arith.constant 0 : i32
    return %arg0, %c0_i32 : i32, i32
  }
  func.func @transform_6(%arg0: i32) -> (i32, i32) {
    %c0_i32 = arith.constant 0 : i32
    %c0_i32_0 = arith.constant 0 : i32
    return %arg0, %c0_i32 : i32, i32
  }
}

</mosaic_0001>

<bundles_post_ra>
// kernel: tpu_custom_call.1
= control target key start
LH: loop header
LB: loop body
LE: loop exit
PB: predicated region body
PF: predicated region fallthrough
CT: control target
= control target key end

     0   :  { %12 = vsyncpa [#allocation3], 0  ;;  %s460_s0 = inlined_call_operand.hbm [shape: f32[4,128], index: 0, kind: input, shape index: {}]   ;;  %s461_s1 = inlined_call_operand.hbm [shape: f32[4,128], index: 1, kind: input, shape index: {}]   ;;  %s462_s2 = inlined_call_operand.vmem [shape: f32[4,128], index: 2, kind: input, shape index: {}]   ;;  %s463_s3 = inlined_call_operand.hbm [shape: f32[4,128], index: 3, kind: output, shape index: {0}]   ;;  %s464_s4 = inlined_call_operand.hbm [shape: f32[4,128], index: 4, kind: output, shape index: {1}]   ;;  %s465_s5 = inlined_call_operand.hbm [shape: f32[4,128], index: 5, kind: output, shape index: {2}]   ;;  %s466_s6 = inlined_call_operand.hbm [shape: f32[4,128], index: 6, kind: output, shape index: {3}]  }
   0x1   :  { %13 = vsyncpa [#allocation6], 0 }
   0x2   :  { %14 = vsyncpa [#allocation4], 0 }
   0x3   :  { %15 = vsyncpa [#allocation9], 0 }
   0x4   :  { %16 = vsyncpa [#allocation12], 0  ;;  %s314_s21 = smov [#allocation2]   ;;  %s315_s23 = smov [#allocation5]  }
   0x5   :  { %s23_s22 = sshll.u32 %s314_s21, 4  ;;  %s33_s24 = sshll.u32 %s315_s23, 4  ;;  %s24_s22 = int_to_ptr.vmem [resolvable:$true] %s23_s22  ;;  %s34_s24 = int_to_ptr.vmem [resolvable:$true] %s33_s24 }
   0x6   :  { %s172_s27 = scalar_lea.hbm %s460_s0, 64 }
   0x7   :  { %p173_p0 = scmp.ne.s32.totalorder %s460_s0, %s172_s27  ;;  %p176_p1 = scmp.lt.u32.totalorder %s172_s27, %s460_s0 }
   0x9   :  { %p178_p2 = pnand %p176_p1, %p173_p0 }
   0xb   :  { %181 = shalt.err (!%p178_p2)
}
   0xc   :  { %s182_s8 = scalar_lea.vmem %s24_s22, 64  ;;  %p187_p4 = scmp.lt.s32.totalorder %s24_s22, %s24_s22 }
   0xd   :  { %p183_p3 = scmp.ne.s32.totalorder %s24_s22, %s182_s8  ;;  %p188_p5 = scmp.lt.s32.totalorder %s182_s8, %s182_s8 }
   0xf   :  { %p189_p6 = por %p188_p5, %p187_p4 }
  0x11   :  { %p190_p7 = pnand %p189_p6, %p183_p3 }
  0x13   :  { %193 = shalt.err (!%p190_p7)
}
  0x14   :  { %26 = dma.hbm_to_vmem [thread:$0]  %s460_s0, 64, %s24_s22, [#allocation3]  }
  0x15   :  { %s194_s13 = scalar_lea.hbm %s461_s1, 64 }
  0x16   :  { %p195_p8 = scmp.ne.s32.totalorder %s461_s1, %s194_s13  ;;  %p198_p9 = scmp.lt.u32.totalorder %s194_s13, %s461_s1 }
  0x18   :  { %p200_p10 = pnand %p198_p9, %p195_p8 }
  0x1a   :  { %203 = shalt.err (!%p200_p10)
}
  0x1b   :  { %s204_s18 = scalar_lea.vmem %s34_s24, 64  ;;  %p209_p12 = scmp.lt.s32.totalorder %s34_s24, %s34_s24 }
  0x1c   :  { %p205_p11 = scmp.ne.s32.totalorder %s34_s24, %s204_s18  ;;  %p210_p13 = scmp.lt.s32.totalorder %s204_s18, %s204_s18 }
  0x1e   :  { %p211_p0 = por %p210_p13, %p209_p12 }
  0x20   :  { %p212_p1 = pnand %p211_p0, %p205_p11 }
  0x22   :  { %215 = shalt.err (!%p212_p1)
}
  0x23   :  { %36 = dma.hbm_to_vmem [thread:$0]  %s461_s1, 64, %s34_s24, [#allocation6]  }
  0x24   :  { %304 = dma.done.wait [#allocation3], 64  }
  0x25   :  { %305 = vsyncadd [#allocation3], 4294967232 }
  0x26   :  { %306 = dma.done.wait [#allocation6], 64  }
  0x27   :  { %307 = vsyncadd [#allocation6], 4294967232  ;;  %s316_s20 = smov [#allocation8]   ;;  %s317_s22 = smov [#allocation7]   ;;  %v59_v0 = vld [vmem:[#allocation2] sm:$0xf] }
  0x28   :  { %s117_s21 = sshll.u32 %s316_s20, 4  ;;  %s107_s23 = sshll.u32 %s317_s22, 4  ;;  %v160_v1 = vld [vmem:[#allocation5 + $0x1] ss:$0 sm:$0xff]  ;;  %v161_v2 = vld [vmem:[%s462_s2 + $0x1] ss:$0 sm:$0xff]  ;;  %s118_s21 = int_to_ptr.vmem [resolvable:$true] %s117_s21  ;;  %s391_s23 = int_to_ptr.vmem [resolvable:$true] %s107_s23 }
  0x29   :  { %s318_s25 = smov [#allocation10]   ;;  %s319_s27 = smov [#allocation11]   ;;  %v66_v3 = vmul.f32 %v160_v1, %v59_v0  ;;  %v45_v4 = vld [vmem:[#allocation2] sm:$0xf]  ;;  %v158_v5 = vld [vmem:[#allocation5] ss:$0 sm:$0xff] }
  0x2a   :  { %s127_s26 = sshll.u32 %s318_s25, 4  ;;  %s137_s28 = sshll.u32 %s319_s27, 4  ;;  %v159_v6 = vld [vmem:[%s462_s2] ss:$0 sm:$0xff]  ;;  %v52_v7 = vmul.f32 %v158_v5, %v45_v4  ;;  %v162_v9 = vld [vmem:[#allocation5 + $0x2] ss:$0 sm:$0xff]  ;;  %s393_s26 = int_to_ptr.vmem [resolvable:$true] %s127_s26  ;;  %s395_s28 = int_to_ptr.vmem [resolvable:$true] %s137_s28 }
  0x2b   :  { %v73_v8 = vld [vmem:[#allocation2] sm:$0xf]  ;;  %v71_v11 = vadd.f32 %v161_v2, %v66_v3  ;;  %v164_v14 = vld [vmem:[#allocation5 + $0x3] ss:$0 sm:$0xff]  ;;  %s216_s11 = scalar_lea.vmem %s118_s21, 64  ;;  %p221_p3 = scmp.lt.s32.totalorder %s118_s21, %s118_s21 }
  0x2c   :  { %v163_v10 = vld [vmem:[%s462_s2 + $0x2] ss:$0 sm:$0xff]  ;;  %v80_v12 = vmul.f32 %v162_v9, %v73_v8  ;;  %v165_v15 = vld [vmem:[%s462_s2 + $0x3] ss:$0 sm:$0xff]  ;;  %v57_v16 = vadd.f32 %v159_v6, %v52_v7  ;;  %p217_p2 = scmp.ne.s32.totalorder %s118_s21, %s216_s11  ;;  %p222_p4 = scmp.lt.s32.totalorder %s216_s11, %s216_s11 }
  0x2d   :  { %v87_v13 = vld [vmem:[#allocation2] sm:$0xf]  ;;  %72 = vst [vmem:[#allocation8] sm:$0xf] %v71_v11 }
  0x2e   :  { %v94_v17 = vmul.f32 %v164_v14, %v87_v13  ;;  %v85_v18 = vadd.f32 %v163_v10, %v80_v12  ;;  %58 = vst [vmem:[#allocation7] sm:$0xf] %v57_v16  ;;  %p223_p5 = por %p222_p4, %p221_p3 }
  0x30   :  { %v99_v19 = vadd.f32 %v165_v15, %v94_v17  ;;  %p224_p6 = pnand %p223_p5, %p217_p2 }
  0x32   :  { %227 = shalt.err (!%p224_p6)
}
  0x33   :  { %s228_s13 = scalar_lea.hbm %s464_s4, 64 }
  0x34   :  { %p229_p7 = scmp.ne.s32.totalorder %s464_s4, %s228_s13  ;;  %p232_p8 = scmp.lt.u32.totalorder %s228_s13, %s464_s4 }
  0x36   :  { %p234_p9 = pnand %p232_p8, %p229_p7 }
  0x38   :  { %237 = shalt.err (!%p234_p9)
}
  0x39   :  { %120 = dma.vmem_to_hbm [thread:$0]  %s118_s21, 64, %s464_s4, [#allocation9]   ;;  %86 = vst [vmem:[#allocation10] sm:$0xf] %v85_v18 }
  0x3a   :  { %s238_s19 = scalar_lea.vmem %s391_s23, 64  ;;  %p243_p11 = scmp.lt.s32.totalorder %s391_s23, %s391_s23 }
  0x3b   :  { %p239_p10 = scmp.ne.s32.totalorder %s391_s23, %s238_s19  ;;  %p244_p12 = scmp.lt.s32.totalorder %s238_s19, %s238_s19 }
  0x3d   :  { %p245_p13 = por %p244_p12, %p243_p11 }
  0x3f   :  { %p246_p0 = pnand %p245_p13, %p239_p10 }
  0x41   :  { %249 = shalt.err (!%p246_p0)
}
  0x42   :  { %s250_s25 = scalar_lea.hbm %s463_s3, 64 }
  0x43   :  { %p251_p1 = scmp.ne.s32.totalorder %s463_s3, %s250_s25  ;;  %p254_p2 = scmp.lt.u32.totalorder %s250_s25, %s463_s3 }
  0x45   :  { %p256_p3 = pnand %p254_p2, %p251_p1 }
  0x47   :  { %259 = shalt.err (!%p256_p3)
}
  0x48   :  { %110 = dma.vmem_to_hbm [thread:$0]  %s391_s23, 64, %s463_s3, [#allocation4]   ;;  %100 = vst [vmem:[#allocation11] sm:$0xf] %v99_v19 }
  0x49   :  { %s260_s24 = scalar_lea.vmem %s393_s26, 64  ;;  %p265_p5 = scmp.lt.s32.totalorder %s393_s26, %s393_s26 }
  0x4a   :  { %p261_p4 = scmp.ne.s32.totalorder %s393_s26, %s260_s24  ;;  %p266_p6 = scmp.lt.s32.totalorder %s260_s24, %s260_s24 }
  0x4c   :  { %p267_p7 = por %p266_p6, %p265_p5 }
  0x4e   :  { %p268_p8 = pnand %p267_p7, %p261_p4 }
  0x50   :  { %271 = shalt.err (!%p268_p8)
}
  0x51   :  { %s272_s9 = scalar_lea.hbm %s465_s5, 64 }
  0x52   :  { %p273_p9 = scmp.ne.s32.totalorder %s465_s5, %s272_s9  ;;  %p276_p10 = scmp.lt.u32.totalorder %s272_s9, %s465_s5 }
  0x54   :  { %p278_p11 = pnand %p276_p10, %p273_p9 }
  0x56   :  { %281 = shalt.err (!%p278_p11)
}
  0x57   :  { %130 = dma.vmem_to_hbm [thread:$0]  %s393_s26, 64, %s465_s5, [#allocation9]  }
  0x58   :  { %s282_s13 = scalar_lea.vmem %s395_s28, 64  ;;  %p287_p13 = scmp.lt.s32.totalorder %s395_s28, %s395_s28 }
  0x59   :  { %p283_p12 = scmp.ne.s32.totalorder %s395_s28, %s282_s13  ;;  %p288_p0 = scmp.lt.s32.totalorder %s282_s13, %s282_s13 }
  0x5b   :  { %p289_p1 = por %p288_p0, %p287_p13 }
  0x5d   :  { %p290_p2 = pnand %p289_p1, %p283_p12 }
  0x5f   :  { %293 = shalt.err (!%p290_p2)
}
  0x60   :  { %s294_s16 = scalar_lea.hbm %s466_s6, 64 }
  0x61   :  { %p295_p3 = scmp.ne.s32.totalorder %s466_s6, %s294_s16  ;;  %p298_p4 = scmp.lt.u32.totalorder %s294_s16, %s466_s6 }
  0x63   :  { %p300_p5 = pnand %p298_p4, %p295_p3 }
  0x65   :  { %303 = shalt.err (!%p300_p5)
}
  0x66   :  { %140 = dma.vmem_to_hbm [thread:$0]  %s395_s28, 64, %s466_s6, [#allocation12]  }
  0x67   :  { %308 = dma.done.wait [#allocation4], 64  }
  0x68   :  { %309 = vsyncadd [#allocation4], 4294967232 }
  0x69   :  { %310 = dma.done.wait [#allocation9], 128  }
  0x6a   :  { %311 = vsyncadd [#allocation9], 4294967168 }
  0x6b   :  { %312 = dma.done.wait [#allocation12], 64  }
  0x6c   :  { %313 = vsyncadd [#allocation12], 4294967232 }
  0x6d   :  { %153 = vsyncpa [#allocation3], 1 }
  0x6e   :  { %154 = vsyncpa [#allocation6], 1 }
  0x6f   :  { %155 = vsyncpa [#allocation4], 1 }
  0x70   :  { %156 = vsyncpa [#allocation9], 1 }
  0x71   :  { %157 = vsyncpa [#allocation12], 1 }

</bundles_post_ra>
